<compile_context>
chip_gen: v5e
topology: v5e:2x2
jax: 0.10.0
libtpu: 0.0.40
codegen_flags: <defaults>
</compile_context>

<pallas_src>
import functools

import numpy as np
import jax
import jax.numpy as jnp
from jax.experimental import pallas as pl
from jax.experimental.pallas import tpu as pltpu


def _round_up(x, m):
    return (x + m - 1) // m * m


def _fasttext_kernel(enc_ref, add_ref, mask_ref, emb_ref, cat_ref, wt_ref,
                     b_ref, out_ref):
    # enc_ref  : (TB, S)    int32  token ids for this batch tile
    # add_ref  : (TB, C)    int32  globalized categorical ids
    # mask_ref : (1, V)     f32    1.0 where embedding row-sum != 0
    # emb_ref  : (V, D)     bf16   token embedding table
    # cat_ref  : (Vcat, D)  bf16   concatenated categorical tables
    # wt_ref   : (D, NCp)   bf16   fc weight, transposed, lane-padded
    # b_ref    : (1, NCp)   f32    fc bias, lane-padded
    # out_ref  : (TB, NCp)  f32
    ids = enc_ref[...]                       # (TB, S)
    gids = add_ref[...]                      # (TB, C)
    TB, S = ids.shape
    V = emb_ref.shape[0]
    Vcat = cat_ref.shape[0]
    C = gids.shape[1]

    # --- token-count matrix, lane-dense over V: counts[b, v] = #{s: ids[b,s]==v}
    iota_v = jax.lax.broadcasted_iota(jnp.int32, (TB, V), 1)
    counts = jnp.zeros((TB, V), jnp.float32)
    for s in range(S):                       # S is static -> unrolled VPU compares
        counts = counts + (ids[:, s:s + 1] == iota_v).astype(jnp.float32)

    # --- number of tokens whose embedding row-sum != 0 (reference semantics)
    nz = jnp.sum(counts * mask_ref[...], axis=-1, keepdims=True)      # (TB, 1)

    # --- embedding-bag sum: one (TB,V)@(V,D) MXU matmul, f32 accumulation
    x1_sum = jnp.dot(counts.astype(emb_ref.dtype), emb_ref[...],
                     preferred_element_type=jnp.float32)              # (TB, D)
    inv_nz = pl.reciprocal(nz, approx=True)                           # EUP slot
    # nz == 0  <=>  all token rows zero  <=>  x1_sum == 0; torch.nan_to_num(0/0)
    # gives 0, which the where() reproduces exactly.
    x1 = jnp.where(nz > 0.0, x1_sum * inv_nz, 0.0)

    # --- categorical embeddings summed over features, via one counts matmul
    iota_c = jax.lax.broadcasted_iota(jnp.int32, (TB, Vcat), 1)
    cat_counts = jnp.zeros((TB, Vcat), jnp.float32)
    for c in range(C):                       # C is static
        cat_counts = cat_counts + (gids[:, c:c + 1] == iota_c).astype(jnp.float32)
    cat_sum = jnp.dot(cat_counts.astype(cat_ref.dtype), cat_ref[...],
                      preferred_element_type=jnp.float32)             # (TB, D)

    # --- final linear layer, lane-dense padded output
    x_in = x1 + cat_sum                                               # (TB, D)
    z = jnp.dot(x_in.astype(wt_ref.dtype), wt_ref[...],
                preferred_element_type=jnp.float32)                   # (TB, NCp)
    out_ref[...] = z + b_ref[...]


@functools.partial(jax.jit, static_argnames=("cat_vocab_sizes", "batch_tile"))
def fasttext_forward(encoded_text, additional_inputs, emb_table, cat_table_flat,
                     fc_w, fc_b, cat_vocab_sizes, batch_tile=128):
    B, S = encoded_text.shape
    C = additional_inputs.shape[1]
    V, D = emb_table.shape
    Vcat = cat_table_flat.shape[0]
    NC = fc_w.shape[0]
    assert len(cat_vocab_sizes) == C and C >= 1

    # Static categorical offsets, computed with numpy at trace time.
    sizes = np.asarray(cat_vocab_sizes, dtype=np.int64)
    offsets = jnp.asarray(
        np.concatenate([[0], np.cumsum(sizes)[:-1]]).astype(np.int32))

    # Batch tiling: TB rows per grid step; pad batch up to a multiple of TB.
    TB = min(int(batch_tile), _round_up(B, 8))
    B_pad = _round_up(B, TB)
    NCp = _round_up(NC, 128)                 # lane-dense output store

    # bf16 tables (halve VMEM footprint and HBM->VMEM DMA bytes); matmuls
    # accumulate in f32 on the MXU.
    emb_bf16 = emb_table.astype(jnp.bfloat16)
    cat_bf16 = cat_table_flat.astype(jnp.bfloat16)
    wt = jnp.zeros((D, NCp), jnp.bfloat16).at[:, :NC].set(
        fc_w.T.astype(jnp.bfloat16))
    bias = jnp.zeros((1, NCp), jnp.float32).at[0, :NC].set(
        fc_b.astype(jnp.float32))
    # Non-zero-row mask: the same (row-sum != 0) test the reference applies to
    # the gathered embeddings (only the padding row is zero in practice).
    mask = (jnp.sum(emb_bf16.astype(jnp.float32), axis=1) != 0.0)
    mask = mask.astype(jnp.float32).reshape(1, V)

    # Pad inputs; padded rows use padding tokens / index 0 and are sliced off.
    enc = jnp.zeros((B_pad, S), jnp.int32).at[:B].set(
        encoded_text.astype(jnp.int32))
    add = jnp.zeros((B_pad, C), jnp.int32).at[:B].set(
        additional_inputs.astype(jnp.int32))
    add = add + offsets[None, :]             # globalize into concatenated table

    out = pl.pallas_call(
        _fasttext_kernel,
        out_shape=jax.ShapeDtypeStruct((B_pad, NCp), jnp.float32),
        grid=(B_pad // TB,),
        in_specs=[
            pl.BlockSpec((TB, S), lambda b: (b, 0)),
            pl.BlockSpec((TB, C), lambda b: (b, 0)),
            pl.BlockSpec((1, V), lambda b: (0, 0)),
            pl.BlockSpec((V, D), lambda b: (0, 0)),
            pl.BlockSpec((Vcat, D), lambda b: (0, 0)),
            pl.BlockSpec((D, NCp), lambda b: (0, 0)),
            pl.BlockSpec((1, NCp), lambda b: (0, 0)),
        ],
        out_specs=pl.BlockSpec((TB, NCp), lambda b: (b, 0)),
        compiler_params=pltpu.CompilerParams(
            dimension_semantics=("parallel",)),   # batch tiles are independent
    )(enc, add, mask, emb_bf16, cat_bf16, wt, bias)
    return out[:B, :NC]


def reference_forward(encoded_text, additional_inputs, emb_table, cat_tables,
                      fc_w, fc_b):
    """Pure-JAX replica of the PyTorch forward (for verification)."""
    x = emb_table[encoded_text]                          # (B, S, D)
    nz = (x.sum(-1) != 0).sum(-1).astype(jnp.float32)    # (B,)
    x1 = x.sum(-2) / nz[:, None]
    x1 = jnp.nan_to_num(x1)
    cat_sum = 0.0
    for i, tbl in enumerate(cat_tables):
        cat_sum = cat_sum + tbl[additional_inputs[:, i]]
    x_in = x1 + cat_sum
    return x_in @ fc_w.T + fc_b[None, :]


if __name__ == "__main__":
    # Small, deterministic configuration consistent with the module's __init__.
    B = 2            # batch size
    S = 8            # seq len (padded tokens)
    D = 32           # embedding_dim
    V = 64           # vocab_size
    NC = 16          # num_classes
    CAT_VOCABS = (10, 12)   # categorical_vocabulary_sizes
    PADDING_IDX = 0

    key = jax.random.PRNGKey(0)
    k_emb, k_cat0, k_cat1, k_w, k_b, k_txt, k_add = jax.random.split(key, 7)

    # nn.Embedding(vocab, D, padding_idx=0): padding row is zero.
    emb_table = jax.random.normal(k_emb, (V, D), jnp.float32) * 0.1
    emb_table = emb_table.at[PADDING_IDX].set(0.0)

    cat_tables = [
        jax.random.normal(k_cat0, (CAT_VOCABS[0], D), jnp.float32) * 0.1,
        jax.random.normal(k_cat1, (CAT_VOCABS[1], D), jnp.float32) * 0.1,
    ]
    cat_table_flat = jnp.concatenate(cat_tables, axis=0)

    # nn.Linear(D, NC)
    fc_w = jax.random.normal(k_w, (NC, D), jnp.float32) * 0.1
    fc_b = jax.random.normal(k_b, (NC,), jnp.float32) * 0.1

    # Tokenized+padded text (some padding tokens = 0) and categorical features.
    encoded_text = jax.random.randint(k_txt, (B, S), 0, V, jnp.int32)
    encoded_text = encoded_text.at[:, -2:].set(PADDING_IDX)  # force some padding
    additional_inputs = jnp.stack(
        [jax.random.randint(jax.random.fold_in(k_add, i), (B,), 0,
                            CAT_VOCABS[i], jnp.int32)
         for i in range(len(CAT_VOCABS))], axis=1)            # (B, C)

    out = fasttext_forward(encoded_text, additional_inputs, emb_table,
                           cat_table_flat, fc_w, fc_b, CAT_VOCABS)
    out = jax.block_until_ready(out)

    # Verify against a pure-JAX reference evaluated with the same bf16-quantized
    # weights the kernel uses (accumulation remains f32 in both).
    emb_q = emb_table.astype(jnp.bfloat16).astype(jnp.float32)
    cat_q = [t.astype(jnp.bfloat16).astype(jnp.float32) for t in cat_tables]
    fc_w_q = fc_w.astype(jnp.bfloat16).astype(jnp.float32)
    ref = reference_forward(encoded_text, additional_inputs, emb_q, cat_q,
                            fc_w_q, fc_b)

    assert out.shape == (B, NC)
    assert jnp.allclose(out, ref, atol=3e-3, rtol=3e-3), (out, ref)
    print("KERNEL_OK")
</pallas_src>

<mosaic_0001>
module attributes {stable_mosaic.version = 11 : i64} {
  func.func @_fasttext_kernel(%arg0: i32, %arg1: memref<8x8xi32, #tpu.memory_space<vmem>>, %arg2: memref<8x2xi32, #tpu.memory_space<vmem>>, %arg3: memref<1x64xf32, #tpu.memory_space<vmem>>, %arg4: memref<64x32xbf16, #tpu.memory_space<vmem>>, %arg5: memref<22x32xbf16, #tpu.memory_space<vmem>>, %arg6: memref<32x128xbf16, #tpu.memory_space<vmem>>, %arg7: memref<1x128xf32, #tpu.memory_space<vmem>>, %arg8: memref<8x128xf32, #tpu.memory_space<vmem>>) attributes {dimension_semantics = [#tpu.dimension_semantics<parallel>], iteration_bounds = array<i64: 1>, scalar_prefetch = 0 : i64, scratch_operands = 0 : i64, tpu.core_type = #tpu.core_type<tc>, window_params = [{transform_indices = @transform_0, window_bounds = array<i64: 8, 8>}, {transform_indices = @transform_1, window_bounds = array<i64: 8, 2>}, {pipeline_mode = #tpu.pipeline_mode<synchronous>, transform_indices = @transform_2, window_bounds = array<i64: 1, 64>}, {pipeline_mode = #tpu.pipeline_mode<synchronous>, transform_indices = @transform_3, window_bounds = array<i64: 64, 32>}, {pipeline_mode = #tpu.pipeline_mode<synchronous>, transform_indices = @transform_4, window_bounds = array<i64: 22, 32>}, {pipeline_mode = #tpu.pipeline_mode<synchronous>, transform_indices = @transform_5, window_bounds = array<i64: 32, 128>}, {pipeline_mode = #tpu.pipeline_mode<synchronous>, transform_indices = @transform_6, window_bounds = array<i64: 1, 128>}, {transform_indices = @transform_7, window_bounds = array<i64: 8, 128>}]} {
    %c0 = arith.constant 0 : index
    %c0_0 = arith.constant 0 : index
    %0 = vector.load %arg1[%c0, %c0_0] : memref<8x8xi32, #tpu.memory_space<vmem>>, vector<8x8xi32>
    %c0_1 = arith.constant 0 : index
    %c0_2 = arith.constant 0 : index
    %1 = vector.load %arg2[%c0_1, %c0_2] : memref<8x2xi32, #tpu.memory_space<vmem>>, vector<8x2xi32>
    %2 = tpu.iota {dimensions = array<i32: 1>} : vector<8x64xi32>
    %cst = arith.constant 0.000000e+00 : f32
    %3 = vector.broadcast %cst : f32 to vector<8x64xf32>
    %4 = vector.extract_strided_slice %0 {offsets = [0, 0], sizes = [8, 1], strides = [1, 1]} : vector<8x8xi32> to vector<8x1xi32>
    %5 = vector.broadcast %4 : vector<8x1xi32> to vector<8x64xi32>
    %6 = arith.cmpi eq, %5, %2 : vector<8x64xi32>
    %7 = arith.extui %6 : vector<8x64xi1> to vector<8x64xi32>
    %8 = arith.sitofp %7 : vector<8x64xi32> to vector<8x64xf32>
    %9 = arith.addf %3, %8 : vector<8x64xf32>
    %10 = vector.extract_strided_slice %0 {offsets = [0, 1], sizes = [8, 1], strides = [1, 1]} : vector<8x8xi32> to vector<8x1xi32>
    %11 = vector.broadcast %10 : vector<8x1xi32> to vector<8x64xi32>
    %12 = arith.cmpi eq, %11, %2 : vector<8x64xi32>
    %13 = arith.extui %12 : vector<8x64xi1> to vector<8x64xi32>
    %14 = arith.sitofp %13 : vector<8x64xi32> to vector<8x64xf32>
    %15 = arith.addf %9, %14 : vector<8x64xf32>
    %16 = vector.extract_strided_slice %0 {offsets = [0, 2], sizes = [8, 1], strides = [1, 1]} : vector<8x8xi32> to vector<8x1xi32>
    %17 = vector.broadcast %16 : vector<8x1xi32> to vector<8x64xi32>
    %18 = arith.cmpi eq, %17, %2 : vector<8x64xi32>
    %19 = arith.extui %18 : vector<8x64xi1> to vector<8x64xi32>
    %20 = arith.sitofp %19 : vector<8x64xi32> to vector<8x64xf32>
    %21 = arith.addf %15, %20 : vector<8x64xf32>
    %22 = vector.extract_strided_slice %0 {offsets = [0, 3], sizes = [8, 1], strides = [1, 1]} : vector<8x8xi32> to vector<8x1xi32>
    %23 = vector.broadcast %22 : vector<8x1xi32> to vector<8x64xi32>
    %24 = arith.cmpi eq, %23, %2 : vector<8x64xi32>
    %25 = arith.extui %24 : vector<8x64xi1> to vector<8x64xi32>
    %26 = arith.sitofp %25 : vector<8x64xi32> to vector<8x64xf32>
    %27 = arith.addf %21, %26 : vector<8x64xf32>
    %28 = vector.extract_strided_slice %0 {offsets = [0, 4], sizes = [8, 1], strides = [1, 1]} : vector<8x8xi32> to vector<8x1xi32>
    %29 = vector.broadcast %28 : vector<8x1xi32> to vector<8x64xi32>
    %30 = arith.cmpi eq, %29, %2 : vector<8x64xi32>
    %31 = arith.extui %30 : vector<8x64xi1> to vector<8x64xi32>
    %32 = arith.sitofp %31 : vector<8x64xi32> to vector<8x64xf32>
    %33 = arith.addf %27, %32 : vector<8x64xf32>
    %34 = vector.extract_strided_slice %0 {offsets = [0, 5], sizes = [8, 1], strides = [1, 1]} : vector<8x8xi32> to vector<8x1xi32>
    %35 = vector.broadcast %34 : vector<8x1xi32> to vector<8x64xi32>
    %36 = arith.cmpi eq, %35, %2 : vector<8x64xi32>
    %37 = arith.extui %36 : vector<8x64xi1> to vector<8x64xi32>
    %38 = arith.sitofp %37 : vector<8x64xi32> to vector<8x64xf32>
    %39 = arith.addf %33, %38 : vector<8x64xf32>
    %40 = vector.extract_strided_slice %0 {offsets = [0, 6], sizes = [8, 1], strides = [1, 1]} : vector<8x8xi32> to vector<8x1xi32>
    %41 = vector.broadcast %40 : vector<8x1xi32> to vector<8x64xi32>
    %42 = arith.cmpi eq, %41, %2 : vector<8x64xi32>
    %43 = arith.extui %42 : vector<8x64xi1> to vector<8x64xi32>
    %44 = arith.sitofp %43 : vector<8x64xi32> to vector<8x64xf32>
    %45 = arith.addf %39, %44 : vector<8x64xf32>
    %46 = vector.extract_strided_slice %0 {offsets = [0, 7], sizes = [8, 1], strides = [1, 1]} : vector<8x8xi32> to vector<8x1xi32>
    %47 = vector.broadcast %46 : vector<8x1xi32> to vector<8x64xi32>
    %48 = arith.cmpi eq, %47, %2 : vector<8x64xi32>
    %49 = arith.extui %48 : vector<8x64xi1> to vector<8x64xi32>
    %50 = arith.sitofp %49 : vector<8x64xi32> to vector<8x64xf32>
    %51 = arith.addf %45, %50 : vector<8x64xf32>
    %c0_3 = arith.constant 0 : index
    %c0_4 = arith.constant 0 : index
    %52 = vector.load %arg3[%c0_3, %c0_4] : memref<1x64xf32, #tpu.memory_space<vmem>>, vector<1x64xf32>
    %53 = vector.broadcast %52 : vector<1x64xf32> to vector<8x64xf32>
    %54 = arith.mulf %51, %53 : vector<8x64xf32>
    %cst_5 = arith.constant dense<0.000000e+00> : vector<8xf32>
    %55 = vector.multi_reduction <add>, %54, %cst_5 [1] : vector<8x64xf32> to vector<8xf32>
    %56 = vector.shape_cast %55 : vector<8xf32> to vector<8x1xf32>
    %57 = arith.truncf %51 : vector<8x64xf32> to vector<8x64xbf16>
    %c0_6 = arith.constant 0 : index
    %c0_7 = arith.constant 0 : index
    %58 = vector.load %arg4[%c0_6, %c0_7] : memref<64x32xbf16, #tpu.memory_space<vmem>>, vector<64x32xbf16>
    %cst_8 = arith.constant dense<0.000000e+00> : vector<8x32xf32>
    %59 = tpu.matmul %57, %58, %cst_8 {dimension_numbers = #tpu.dot_dimension_numbers<[1], [0], [0], [1], [0, 0, 1, 1], [], []>} : vector<8x64xbf16>, vector<64x32xbf16>, vector<8x32xf32> -> vector<8x32xf32>
    %60 = tpu.reciprocal %56 {approx = true} : vector<8x1xf32> -> vector<8x1xf32>
    %cst_9 = arith.constant 0.000000e+00 : f32
    %61 = vector.broadcast %cst_9 : f32 to vector<8x1xf32>
    %62 = arith.cmpf ogt, %56, %61 : vector<8x1xf32>
    %63 = vector.broadcast %60 : vector<8x1xf32> to vector<8x32xf32>
    %64 = arith.mulf %59, %63 : vector<8x32xf32>
    %cst_10 = arith.constant 0.000000e+00 : f32
    %65 = vector.shape_cast %62 : vector<8x1xi1> to vector<8x1xi1>
    %66 = vector.broadcast %65 : vector<8x1xi1> to vector<8x32xi1>
    %67 = vector.broadcast %cst_10 : f32 to vector<8x32xf32>
    %68 = arith.select %66, %64, %67 : vector<8x32xi1>, vector<8x32xf32>
    %69 = tpu.iota {dimensions = array<i32: 1>} : vector<8x22xi32>
    %cst_11 = arith.constant 0.000000e+00 : f32
    %70 = vector.broadcast %cst_11 : f32 to vector<8x22xf32>
    %71 = vector.extract_strided_slice %1 {offsets = [0, 0], sizes = [8, 1], strides = [1, 1]} : vector<8x2xi32> to vector<8x1xi32>
    %72 = vector.broadcast %71 : vector<8x1xi32> to vector<8x22xi32>
    %73 = arith.cmpi eq, %72, %69 : vector<8x22xi32>
    %74 = arith.extui %73 : vector<8x22xi1> to vector<8x22xi32>
    %75 = arith.sitofp %74 : vector<8x22xi32> to vector<8x22xf32>
    %76 = arith.addf %70, %75 : vector<8x22xf32>
    %77 = vector.extract_strided_slice %1 {offsets = [0, 1], sizes = [8, 1], strides = [1, 1]} : vector<8x2xi32> to vector<8x1xi32>
    %78 = vector.broadcast %77 : vector<8x1xi32> to vector<8x22xi32>
    %79 = arith.cmpi eq, %78, %69 : vector<8x22xi32>
    %80 = arith.extui %79 : vector<8x22xi1> to vector<8x22xi32>
    %81 = arith.sitofp %80 : vector<8x22xi32> to vector<8x22xf32>
    %82 = arith.addf %76, %81 : vector<8x22xf32>
    %83 = arith.truncf %82 : vector<8x22xf32> to vector<8x22xbf16>
    %c0_12 = arith.constant 0 : index
    %c0_13 = arith.constant 0 : index
    %84 = vector.load %arg5[%c0_12, %c0_13] : memref<22x32xbf16, #tpu.memory_space<vmem>>, vector<22x32xbf16>
    %cst_14 = arith.constant dense<0.000000e+00> : vector<8x32xf32>
    %85 = tpu.matmul %83, %84, %cst_14 {dimension_numbers = #tpu.dot_dimension_numbers<[1], [0], [0], [1], [0, 0, 1, 1], [], []>} : vector<8x22xbf16>, vector<22x32xbf16>, vector<8x32xf32> -> vector<8x32xf32>
    %86 = arith.addf %68, %85 : vector<8x32xf32>
    %87 = arith.truncf %86 : vector<8x32xf32> to vector<8x32xbf16>
    %c0_15 = arith.constant 0 : index
    %c0_16 = arith.constant 0 : index
    %88 = vector.load %arg6[%c0_15, %c0_16] : memref<32x128xbf16, #tpu.memory_space<vmem>>, vector<32x128xbf16>
    %cst_17 = arith.constant dense<0.000000e+00> : vector<8x128xf32>
    %89 = tpu.matmul %87, %88, %cst_17 {dimension_numbers = #tpu.dot_dimension_numbers<[1], [0], [0], [1], [0, 0, 1, 1], [], []>} : vector<8x32xbf16>, vector<32x128xbf16>, vector<8x128xf32> -> vector<8x128xf32>
    %c0_18 = arith.constant 0 : index
    %c0_19 = arith.constant 0 : index
    %90 = vector.load %arg7[%c0_18, %c0_19] : memref<1x128xf32, #tpu.memory_space<vmem>>, vector<1x128xf32>
    %91 = vector.broadcast %90 : vector<1x128xf32> to vector<8x128xf32>
    %92 = arith.addf %89, %91 : vector<8x128xf32>
    %c0_20 = arith.constant 0 : index
    %c0_21 = arith.constant 0 : index
    %93 = vector.load %arg8[%c0_20, %c0_21] : memref<8x128xf32, #tpu.memory_space<vmem>>, vector<8x128xf32>
    tpu.vector_store %arg8[%c0_20, %c0_21], %92 {strides = array<i32>} : memref<8x128xf32, #tpu.memory_space<vmem>>, vector<8x128xf32>,
    return
  }
  func.func @transform_0(%arg0: i32) -> (i32, i32) {
    %c0_i32 = arith.constant 0 : i32
    %c0_i32_0 = arith.constant 0 : i32
    return %arg0, %c0_i32 : i32, i32
  }
  func.func @transform_1(%arg0: i32) -> (i32, i32) {
    %c0_i32 = arith.constant 0 : i32
    %c0_i32_0 = arith.constant 0 : i32
    return %arg0, %c0_i32 : i32, i32
  }
  func.func @transform_2(%arg0: i32) -> (i32, i32) {
    %c0_i32 = arith.constant 0 : i32
    %c0_i32_0 = arith.constant 0 : i32
    %c0_i32_1 = arith.constant 0 : i32
    return %c0_i32, %c0_i32_0 : i32, i32
  }
  func.func @transform_3(%arg0: i32) -> (i32, i32) {
    %c0_i32 = arith.constant 0 : i32
    %c0_i32_0 = arith.constant 0 : i32
    %c0_i32_1 = arith.constant 0 : i32
    return %c0_i32, %c0_i32_0 : i32, i32
  }
  func.func @transform_4(%arg0: i32) -> (i32, i32) {
    %c0_i32 = arith.constant 0 : i32
    %c0_i32_0 = arith.constant 0 : i32
    %c0_i32_1 = arith.constant 0 : i32
    return %c0_i32, %c0_i32_0 : i32, i32
  }
  func.func @transform_5(%arg0: i32) -> (i32, i32) {
    %c0_i32 = arith.constant 0 : i32
    %c0_i32_0 = arith.constant 0 : i32
    %c0_i32_1 = arith.constant 0 : i32
    return %c0_i32, %c0_i32_0 : i32, i32
  }
  func.func @transform_6(%arg0: i32) -> (i32, i32) {
    %c0_i32 = arith.constant 0 : i32
    %c0_i32_0 = arith.constant 0 : i32
    %c0_i32_1 = arith.constant 0 : i32
    return %c0_i32, %c0_i32_0 : i32, i32
  }
  func.func @transform_7(%arg0: i32) -> (i32, i32) {
    %c0_i32 = arith.constant 0 : i32
    %c0_i32_0 = arith.constant 0 : i32
    return %arg0, %c0_i32 : i32, i32
  }
}

</mosaic_0001>

<bundles_post_ra>
// kernel: fasttext_forward.1
= control target key start
LH: loop header
LB: loop body
LE: loop exit
PB: predicated region body
PF: predicated region fallthrough
CT: control target
= control target key end

     0   :  { %v315_v0 = vmov 2   ;;  %v316_v1 = vmov 0   ;;  %v317_v3 = vmov 4   ;;  %v318_v4 = vmov 3   ;;  %s403_s0 = inlined_call_operand.vmem [shape: s32[8,8], index: 0, kind: input, shape index: {}]   ;;  %s404_s2 = inlined_call_operand.vmem [shape: f32[1,64], index: 2, kind: input, shape index: {}]   ;;  %s405_s1 = inlined_call_operand.vmem [shape: s32[8,2], index: 1, kind: input, shape index: {}]   ;;  %s406_s3 = inlined_call_operand.vmem [shape: bf16[64,32], index: 3, kind: input, shape index: {}]   ;;  %s407_s4 = inlined_call_operand.vmem [shape: bf16[22,32], index: 4, kind: input, shape index: {}]   ;;  %s408_s6 = inlined_call_operand.vmem [shape: f32[1,128], index: 6, kind: input, shape index: {}]   ;;  %s409_s5 = inlined_call_operand.vmem [shape: bf16[32,128], index: 5, kind: input, shape index: {}]   ;;  %s410_s7 = inlined_call_operand.vmem [shape: f32[8,128], index: 7, kind: output, shape index: {}]  }
   0x1   :  { %302 = vset.pattern.permute.xlu1 %v315_v0  ;;  %300 = vset.pattern.permute.xlu0 %v316_v1  ;;  %v27_v2 = vld [vmem:[%s403_s0] sm:$0xff]  ;;  %v319_v5 = vmov 1   ;;  %v320_v6 = vmov 5   ;;  %v321_v8 = vmov 6   ;;  %v322_v9 = vmov 7   ;;  %v287_v10 = vld [vmem:[%s406_s3 + $0x18] sm:$0xff] }
   0x2   :  { %46 = vperm.xlu1 %302, %v27_v2   ;;  %32 = vperm.xlu0 %300, %v27_v2   ;;  %v28_v7 = vld [vmem:[%s405_s1] sm:$0xff]  ;;  %v286_v11 = vld [vmem:[%s406_s3 + $0x10] sm:$0xff]  ;;  %v285_v12 = vld [vmem:[%s406_s3 + $0x8] sm:$0xff]  ;;  %vm182_vm0 = vcmask 1042432   ;;  %v29_v22 = vlaneseq  ;;  %v323_v27 = vmov 0.0   ;;  %vm92_vm10 = vcmask 523264  }
   0x3   :  { %304 = vset.pattern.permute.xlu2 %v317_v3  ;;  %136 = vmatpush.bf16.msra.mxu0 %v287_v10  ;;  %v168_v13 = vld [vmem:[%s407_s4 + $0x8] sm:$0x7]  ;;  %v284_v15 = vld [vmem:[%s406_s3] sm:$0xff]  ;;  %vm178_vm12 = vcmask 179200   ;;  %vm221_vm14 = vcmask 261120  }
   0x4   :  { %60 = vperm.xlu2 %304, %v27_v2   ;;  %v174_v14 = vunpack.c.l.b16 %v168_v13  ;;  %v288_v19 = vld [vmem:[%s407_s4] sm:$0xff]  ;;  %v30_v24 = vand.u32 127, %v29_v22  ;;  %v290_v55 = vld [vmem:[%s409_s5 + $0x8] sm:$0xff] }
   0x5   :  { %v311_v45 = vld [vmem:[%s404_s2] ss:$0 sm:$0xff]  ;;  %231 = vmatpush.bf16.msra.mxu2 %v290_v55 }
   0x6   :  { %v176_v16 = vpack.c.b16 %v174_v14, %v174_v14  ;;  %v289_v56 = vld [vmem:[%s409_s5] sm:$0xff] }
   0x7   :  { %137 = vmatpush.bf16.msra.mxu0 %v286_v11  ;;  %v312_v3 = vld [vmem:[%s408_s6] ss:$0 sm:$0xff] }
   0x8   :  { %v184_v17 = vsel %vm182_vm0, %v176_v16, 0 }
   0x9   :  { %192 = vmatpush.bf16.msra.mxu1 %v184_v17  ;;  %232 = vmatpush.bf16.msra.mxu2 %v289_v56 }
   0xa   :  { %303 = vset.pattern.permute.xlu1 %v318_v4  ;;  %301 = vset.pattern.permute.xlu0 %v319_v5 }
   0xb   :  { %53 = vperm.xlu1 %303, %v27_v2   ;;  %39 = vperm.xlu0 %301, %v27_v2  }
   0xc   :  { %305 = vset.pattern.permute.xlu2 %v320_v6  ;;  %138 = vmatpush.bf16.msra.mxu0 %v285_v12 }
   0xd   :  { %67 = vperm.xlu2 %305, %v27_v2   ;;  %193 = vmatpush.bf16.msra.mxu1 %v288_v19 }
  0x10   :  { %139 = vmatpush.bf16.msra.mxu0 %v284_v15 }
  0x13   :  { %306 = vset.pattern.permute.xlu1 %v321_v8  ;;  %308 = vset.pattern.permute.xlu0 %v316_v1 }
  0x14   :  { %74 = vperm.xlu1 %306, %v27_v2   ;;  %152 = vperm.xlu0 %308, %v28_v7  }
  0x15   :  { %307 = vset.pattern.permute.xlu2 %v322_v9 }
  0x16   :  { %81 = vperm.xlu2 %307, %v27_v2  }
  0x1c   :  { %309 = vset.pattern.permute.xlu1 %v319_v5  ;;  %310 = vset.pattern.permute.xlu0 %v319_v5 }
  0x1d   :  { %159 = vperm.xlu1 %309, %v28_v7  }
  0x5e   :  { %v61_v18 = vpop.permute.xlu2 %60 }
  0x5f   :  { %vm62_vm5 = vcmp.eq.s32.totalorder %v61_v18, %v30_v24 }
  0x60   :  { %v247_v36 = vsel %vm62_vm5, 1.0, %v323_v27 }
  0x67   :  { %v68_v23 = vpop.permute.xlu2 %67 }
  0x68   :  { %vm69_vm6 = vcmp.eq.s32.totalorder %v68_v23, %v30_v24 }
  0x69   :  { %v248_v39 = vsel %vm69_vm6, 1.0, %v323_v27 }
  0x70   :  { %v82_v34 = vpop.permute.xlu2 %81 }
  0x71   :  { %vm83_vm7 = vcmp.eq.s32.totalorder %v82_v34, %v30_v24 }
  0x72   :  { %v250_v42 = vsel %vm83_vm7, 1.0, %v323_v27 }
  0x74   :  { %v47_v20 = vpop.permute.xlu1 %46  ;;  %v33_v21 = vpop.permute.xlu0 %32 }
  0x75   :  { %vm34_vm1 = vcmp.eq.s32.totalorder %v33_v21, %v30_v24  ;;  %vm48_vm2 = vcmp.eq.s32.totalorder %v47_v20, %v30_v24 }
  0x76   :  { %v243_v28 = vsel %vm34_vm1, 1.0, %v323_v27  ;;  %v245_v31 = vsel %vm48_vm2, 1.0, %v323_v27 }
  0x7d   :  { %v54_v25 = vpop.permute.xlu1 %53  ;;  %v40_v26 = vpop.permute.xlu0 %39 }
  0x7e   :  { %vm41_vm3 = vcmp.eq.s32.totalorder %v40_v26, %v30_v24  ;;  %vm55_vm4 = vcmp.eq.s32.totalorder %v54_v25, %v30_v24 }
  0x7f   :  { %v244_v29 = vsel %vm41_vm3, 1.0, %v323_v27  ;;  %v246_v33 = vsel %vm55_vm4, 1.0, %v323_v27 }
  0x80   :  { %v44_v30 = vadd.f32 %v244_v29, %v243_v28 }
  0x82   :  { %v51_v32 = vadd.f32 %v245_v31, %v44_v30 }
  0x84   :  { %v58_v35 = vadd.f32 %v246_v33, %v51_v32 }
  0x86   :  { %v65_v37 = vadd.f32 %v247_v36, %v58_v35  ;;  %v75_v38 = vpop.permute.xlu1 %74  ;;  %v153_v43 = vpop.permute.xlu0 %152 }
  0x87   :  { %vm76_vm8 = vcmp.eq.s32.totalorder %v75_v38, %v30_v24  ;;  %vm154_vm9 = vcmp.eq.s32.totalorder %v153_v43, %v30_v24 }
  0x88   :  { %v72_v40 = vadd.f32 %v248_v39, %v65_v37  ;;  %v249_v41 = vsel %vm76_vm8, 1.0, %v323_v27  ;;  %v268_v50 = vsel %vm154_vm9, 1.0, %v323_v27 }
  0x8a   :  { %v79_v44 = vadd.f32 %v249_v41, %v72_v40 }
  0x8c   :  { %v86_v46 = vadd.f32 %v250_v42, %v79_v44 }
  0x8e   :  { %v96_v47 = vpack.c.bf16 %v86_v46, %v86_v46  ;;  %v91_v48 = vmul.f32 %v311_v45, %v86_v46 }
  0x8f   :  { %v160_v49 = vpop.permute.xlu1 %159 }
  0x90   :  { %vm161_vm11 = vcmp.eq.s32.totalorder %v160_v49, %v30_v24  ;;  %267 = vmatmul.msk.bf16.vlgmr.msra.gmra.mxu0 %vm92_vm10, %v96_v47  ;;  %v93_v51 = vsel %vm92_vm10, %v91_v48, 0.0 }
  0x91   :  { %v269_v52 = vsel %vm161_vm11, 1.0, %v323_v27  ;;  %94 = vadd.xlane.f32.xlu2 %v93_v51 }
  0x92   :  { %v164_v53 = vadd.f32 %v269_v52, %v268_v50 }
  0x94   :  { %v165_v54 = vpack.c.bf16 %v164_v53, %v164_v53 }
  0x96   :  { %274 = vmatmul.msk.bf16.vlgmr.msra.gmra.mxu1 %vm178_vm12, %v165_v54 }
 0x104   :  { %v95_v57 = vpop.xlane.xlu2 %94 }
 0x105   :  { %313 = vrcp.f32 %v95_v57  ;;  %vm146_vm13 = vcmp.gt.f32.partialorder %v95_v57, 0.0 }
 0x10b   :  { %v314_v59 = vpop.eup %313 }
 0x10d   :  { %v141_v58 = vpop.f32.mrf.mxu0 }
 0x10e   :  { %v147_v60 = vmul.f32 %v314_v59, %v141_v58 }
 0x110   :  { %v150_v61 = vsel %vm146_vm13, %v147_v60, 0.0 }
 0x113   :  { %v195_v62 = vpop.f32.mrf.mxu1 }
 0x114   :  { %v199_v63 = vadd.f32 %v195_v62, %v150_v61 }
 0x115   :  { %v143_v0 = vpop.f32.mrf.mxu0 }
 0x116   :  { %v200_v1 = vpack.c.bf16 %v199_v63, %v199_v63 }
 0x118   :  { %283 = vmatmul.msk.bf16.vlgmr.msra.gmra.mxu2 %vm221_vm14, %v200_v1 }
 0x11b   :  { %v197_v2 = vpop.f32.mrf.mxu1 }
 0x19b   :  { %v234_v4 = vpop.f32.mrf.mxu2 }
 0x19c   :  { %v235_v5 = vadd.f32 %v312_v3, %v234_v4 }
 0x19e   :  { %238 = vst [vmem:[%s410_s7] sm:$0xff] %v235_v5 }
 0x1a3   :  { %v236_v6 = vpop.f32.mrf.mxu2 }

</bundles_post_ra>
